<compile_context>
chip_gen: v7x
topology: tpu7x:2x2x1
jax: 0.10.0
libtpu: 0.0.40
codegen_flags: <defaults>
</compile_context>

<pallas_src>
import math

import jax
import jax.numpy as jnp
from jax.experimental import pallas as pl
from jax.experimental.pallas import tpu as pltpu

LARGE_NEGATIVE = -math.log(1.0e10)


def _make_flash_kernel(scale, mask_flag):
    neg_fill = float(scale) * LARGE_NEGATIVE  # scale applied before softmax

    def kernel(*refs):
        if mask_flag:
            q_ref, k_ref, v_ref, mask_ref, o_ref, m_scr, l_scr, acc_scr = refs
        else:
            q_ref, k_ref, v_ref, o_ref, m_scr, l_scr, acc_scr = refs
            mask_ref = None

        s_idx = pl.program_id(3)

        @pl.when(s_idx == 0)
        def _init():
            m_scr[...] = jnp.full(m_scr.shape, -jnp.inf, jnp.float32)
            l_scr[...] = jnp.zeros(l_scr.shape, jnp.float32)
            acc_scr[...] = jnp.zeros(acc_scr.shape, jnp.float32)

        # Fold the softmax scale into Q: O(TL*E) multiplies instead of O(TL*TS).
        q = q_ref[0, 0] * scale                       # (TL, E), input dtype
        k = k_ref[0, 0]                               # (TS, E), input dtype

        # scores = (scale*Q) @ K^T, f32 accumulation on the MXU.
        scores = jax.lax.dot_general(
            q, k, (((1,), (1,)), ((), ())),
            preferred_element_type=jnp.float32)       # (TL, TS) f32

        if mask_flag:
            m = mask_ref[0, 0].astype(jnp.float32)    # (TL, TS), shared over H
            # == scale * (raw_scores * mask + where(mask == 0, LARGE_NEG, 0))
            scores = jnp.where(m == 0.0, neg_fill, scores * m)

        # Online softmax update (all statistics in f32).
        m_prev = m_scr[...]                                           # (TL, 1)
        m_new = jnp.maximum(m_prev, jnp.max(scores, axis=-1, keepdims=True))
        alpha = jnp.exp(m_prev - m_new)                               # (TL, 1)
        p = jnp.exp(scores - m_new)                                   # (TL, TS)
        l_scr[...] = alpha * l_scr[...] + jnp.sum(p, axis=-1, keepdims=True)

        v = v_ref[0, 0]                               # (TS, D), input dtype
        pv = jax.lax.dot_general(
            p.astype(v.dtype), v, (((1,), (0,)), ((), ())),
            preferred_element_type=jnp.float32)       # (TL, D) f32
        acc_scr[...] = alpha * acc_scr[...] + pv
        m_scr[...] = m_new

        @pl.when(s_idx == pl.num_programs(3) - 1)
        def _finalize():
            inv = pl.reciprocal(l_scr[...], approx=True)   # EUP reciprocal
            o_ref[0, 0] = (acc_scr[...] * inv).astype(o_ref.dtype)

    return kernel


def _pick_tile(dim, max_tile, multiple):
    """Largest t <= max_tile with t % multiple == 0 and dim % t == 0, else dim."""
    t = (max_tile // multiple) * multiple
    while t >= multiple:
        if dim % t == 0:
            return t
        t -= multiple
    return dim


def _padded_tile_bytes(rows, cols, itemsize):
    return (-(-rows // 8) * 8) * (-(-cols // 128) * 128) * itemsize


def _vmem_limit_bytes(TL, TS, E, D, qkv_bytes, mask_bytes, out_bytes):
    # Double-buffered input/output blocks + f32 scratch, with headroom.
    inputs = 2 * (_padded_tile_bytes(TL, E, qkv_bytes)
                  + _padded_tile_bytes(TS, E, qkv_bytes)
                  + _padded_tile_bytes(TS, D, qkv_bytes)
                  + (_padded_tile_bytes(TL, TS, mask_bytes) if mask_bytes else 0))
    outputs = 2 * _padded_tile_bytes(TL, D, out_bytes)
    scratch = 2 * _padded_tile_bytes(TL, 1, 4) + _padded_tile_bytes(TL, D, 4)
    total = inputs + outputs + scratch
    # Clamp under v7x physical VMEM (64 MiB); keep a generous floor.
    return int(min(64 << 20, max(24 << 20, 2 * total + (4 << 20))))


def full_attention(queries, keys, values, attn_mask=None, *, scale=None,
                   mask_flag=True):
    """Pallas implementation of FullAttention.forward (eval mode, no dropout).

    queries: (B, L, H, E)   keys: (B, S, H, E)   values: (B, S, H, D)
    attn_mask: (B, 1, L, S)
    returns: V of shape (B, L, H, D) (attention weights not returned,
             matching output_attention=False).
    """
    B, L, H, E = queries.shape
    _, S, _, D = values.shape
    scale = float(scale) if scale is not None else 1.0 / math.sqrt(E)

    # One-time H-major relayout so every grid step sees clean 2-D tiles.
    q_t = jnp.transpose(queries, (0, 2, 1, 3))   # (B, H, L, E)
    k_t = jnp.transpose(keys, (0, 2, 1, 3))      # (B, H, S, E)
    v_t = jnp.transpose(values, (0, 2, 1, 3))    # (B, H, S, D)

    # L-tile sits in the sublane slot (multiple of 8 or full L); S-tile sits in
    # the mask's lane slot (multiple of 128 or full S).
    TL = _pick_tile(L, 256, 8)
    TS = _pick_tile(S, 512, 128)

    in_specs = [
        pl.BlockSpec((1, 1, TL, E), lambda b, h, l, s: (b, h, l, 0)),
        pl.BlockSpec((1, 1, TS, E), lambda b, h, l, s: (b, h, s, 0)),
        pl.BlockSpec((1, 1, TS, D), lambda b, h, l, s: (b, h, s, 0)),
    ]
    inputs = [q_t, k_t, v_t]
    mask_bytes = 0
    if mask_flag:
        if attn_mask is None:
            raise ValueError("attn_mask is required when mask_flag=True")
        in_specs.append(
            pl.BlockSpec((1, 1, TL, TS), lambda b, h, l, s: (b, 0, l, s)))
        inputs.append(attn_mask)
        mask_bytes = attn_mask.dtype.itemsize

    vmem_limit = _vmem_limit_bytes(
        TL, TS, E, D, queries.dtype.itemsize, mask_bytes,
        queries.dtype.itemsize)

    out_t = pl.pallas_call(
        _make_flash_kernel(scale, mask_flag),
        out_shape=jax.ShapeDtypeStruct((B, H, L, D), queries.dtype),
        grid_spec=pltpu.PrefetchScalarGridSpec(
            num_scalar_prefetch=0,
            grid=(B, H, L // TL, S // TS),
            in_specs=in_specs,
            out_specs=pl.BlockSpec((1, 1, TL, D), lambda b, h, l, s: (b, h, l, 0)),
            scratch_shapes=[
                pltpu.VMEM((TL, 1), jnp.float32),   # running max
                pltpu.VMEM((TL, 1), jnp.float32),   # running sum
                pltpu.VMEM((TL, D), jnp.float32),   # running PV accumulator
            ],
        ),
        compiler_params=pltpu.CompilerParams(
            dimension_semantics=("parallel", "parallel", "parallel", "arbitrary"),
            vmem_limit_bytes=vmem_limit,
        ),
    )(*inputs)

    # Back to the PyTorch output layout (B, L, H, D).
    return jnp.transpose(out_t, (0, 2, 1, 3))


def _reference(queries, keys, values, attn_mask, *, scale=None, mask_flag=True):
    B, L, H, E = queries.shape
    scale = scale if scale is not None else 1.0 / math.sqrt(E)
    scores = jnp.einsum("blhe,bshe->bhls", queries, keys)
    if mask_flag:
        additive = jnp.where(attn_mask == 0, LARGE_NEGATIVE, 0.0)
        scores = scores * attn_mask + additive
    a = jax.nn.softmax(scale * scores, axis=-1)
    return jnp.einsum("bhls,bshd->blhd", a, values)


if __name__ == "__main__":
    B, L, S, H, E, D = 2, 8, 8, 4, 32, 32

    key = jax.random.PRNGKey(0)
    kq, kk, kv, km = jax.random.split(key, 4)
    queries = jax.random.normal(kq, (B, L, H, E), dtype=jnp.float32)
    keys = jax.random.normal(kk, (B, S, H, E), dtype=jnp.float32)
    values = jax.random.normal(kv, (B, S, H, D), dtype=jnp.float32)
    # binary attention mask, broadcast over heads, as in DUET (B, 1, L, S)
    attn_mask = (jax.random.uniform(km, (B, 1, L, S)) > 0.3).astype(jnp.float32)

    out = full_attention(queries, keys, values, attn_mask)
    out = jax.block_until_ready(out)

    ref = _reference(queries, keys, values, attn_mask)
    assert out.shape == (B, L, H, D)
    # approx-reciprocal normalization -> slightly relaxed tolerance
    assert jnp.allclose(out, ref, atol=2e-3, rtol=2e-3), "mismatch vs reference"

    print("KERNEL_OK")
</pallas_src>

<mosaic_0001>
module attributes {stable_mosaic.version = 11 : i64} {
  func.func @kernel(%arg0: i32, %arg1: i32, %arg2: i32, %arg3: i32, %arg4: memref<1x1x8x32xf32, #tpu.memory_space<vmem>>, %arg5: memref<1x1x8x32xf32, #tpu.memory_space<vmem>>, %arg6: memref<1x1x8x32xf32, #tpu.memory_space<vmem>>, %arg7: memref<1x1x8x8xf32, #tpu.memory_space<vmem>>, %arg8: memref<1x1x8x32xf32, #tpu.memory_space<vmem>>, %arg9: memref<8x1xf32, #tpu.memory_space<vmem>>, %arg10: memref<8x1xf32, #tpu.memory_space<vmem>>, %arg11: memref<8x32xf32, #tpu.memory_space<vmem>>) attributes {dimension_semantics = [#tpu.dimension_semantics<parallel>, #tpu.dimension_semantics<parallel>, #tpu.dimension_semantics<parallel>, #tpu.dimension_semantics<arbitrary>], iteration_bounds = array<i64: 2, 4, 1, 1>, scalar_prefetch = 0 : i64, scratch_operands = 3 : i64, tpu.core_type = #tpu.core_type<tc>, window_params = [{transform_indices = @transform_0, window_bounds = array<i64: 1, 1, 8, 32>}, {transform_indices = @transform_1, window_bounds = array<i64: 1, 1, 8, 32>}, {transform_indices = @transform_2, window_bounds = array<i64: 1, 1, 8, 32>}, {transform_indices = @transform_3, window_bounds = array<i64: 1, 1, 8, 8>}, {transform_indices = @transform_4, window_bounds = array<i64: 1, 1, 8, 32>}]} {
    %c0_i32 = arith.constant 0 : i32
    %0 = arith.cmpi eq, %arg3, %c0_i32 : i32
    %1 = arith.extui %0 : i1 to i32
    %c0_i32_0 = arith.constant 0 : i32
    %2 = arith.cmpi ne, %1, %c0_i32_0 : i32
    scf.if %2 {
      %cst_36 = arith.constant 0xFF800000 : f32
      %44 = vector.broadcast %cst_36 : f32 to vector<8x1xf32>
      %c0_37 = arith.constant 0 : index
      %c0_38 = arith.constant 0 : index
      %45 = vector.load %arg9[%c0_37, %c0_38] : memref<8x1xf32, #tpu.memory_space<vmem>>, vector<8x1xf32>
      tpu.vector_store %arg9[%c0_37, %c0_38], %44 {strides = array<i32>} : memref<8x1xf32, #tpu.memory_space<vmem>>, vector<8x1xf32>,
      %cst_39 = arith.constant 0.000000e+00 : f32
      %46 = vector.broadcast %cst_39 : f32 to vector<8x1xf32>
      %c0_40 = arith.constant 0 : index
      %c0_41 = arith.constant 0 : index
      %47 = vector.load %arg10[%c0_40, %c0_41] : memref<8x1xf32, #tpu.memory_space<vmem>>, vector<8x1xf32>
      tpu.vector_store %arg10[%c0_40, %c0_41], %46 {strides = array<i32>} : memref<8x1xf32, #tpu.memory_space<vmem>>, vector<8x1xf32>,
      %cst_42 = arith.constant 0.000000e+00 : f32
      %48 = vector.broadcast %cst_42 : f32 to vector<8x32xf32>
      %c0_43 = arith.constant 0 : index
      %c0_44 = arith.constant 0 : index
      %49 = vector.load %arg11[%c0_43, %c0_44] : memref<8x32xf32, #tpu.memory_space<vmem>>, vector<8x32xf32>
      tpu.vector_store %arg11[%c0_43, %c0_44], %48 {strides = array<i32>} : memref<8x32xf32, #tpu.memory_space<vmem>>, vector<8x32xf32>,
    } else {
    }
    %c0 = arith.constant 0 : index
    %c0_1 = arith.constant 0 : index
    %c0_2 = arith.constant 0 : index
    %c0_3 = arith.constant 0 : index
    %3 = vector.load %arg4[%c0, %c0_1, %c0_2, %c0_3] : memref<1x1x8x32xf32, #tpu.memory_space<vmem>>, vector<1x1x8x32xf32>
    %4 = vector.shape_cast %3 : vector<1x1x8x32xf32> to vector<8x32xf32>
    %cst = arith.constant 0.176776692 : f32
    %5 = vector.broadcast %cst : f32 to vector<8x32xf32>
    %6 = arith.mulf %4, %5 : vector<8x32xf32>
    %c0_4 = arith.constant 0 : index
    %c0_5 = arith.constant 0 : index
    %c0_6 = arith.constant 0 : index
    %c0_7 = arith.constant 0 : index
    %7 = vector.load %arg5[%c0_4, %c0_5, %c0_6, %c0_7] : memref<1x1x8x32xf32, #tpu.memory_space<vmem>>, vector<1x1x8x32xf32>
    %8 = vector.shape_cast %7 : vector<1x1x8x32xf32> to vector<8x32xf32>
    %cst_8 = arith.constant dense<0.000000e+00> : vector<8x8xf32>
    %9 = tpu.matmul %6, %8, %cst_8 {dimension_numbers = #tpu.dot_dimension_numbers<[1], [1], [0], [0], [0, 0, 1, 0], [], []>} : vector<8x32xf32>, vector<8x32xf32>, vector<8x8xf32> -> vector<8x8xf32>
    %c0_9 = arith.constant 0 : index
    %c0_10 = arith.constant 0 : index
    %c0_11 = arith.constant 0 : index
    %c0_12 = arith.constant 0 : index
    %10 = vector.load %arg7[%c0_9, %c0_10, %c0_11, %c0_12] : memref<1x1x8x8xf32, #tpu.memory_space<vmem>>, vector<1x1x8x8xf32>
    %11 = vector.shape_cast %10 : vector<1x1x8x8xf32> to vector<8x8xf32>
    %cst_13 = arith.constant 0.000000e+00 : f32
    %12 = vector.broadcast %cst_13 : f32 to vector<8x8xf32>
    %13 = arith.cmpf oeq, %11, %12 : vector<8x8xf32>
    %14 = arith.mulf %9, %11 : vector<8x8xf32>
    %cst_14 = arith.constant -4.07043362 : f32
    %15 = vector.broadcast %cst_14 : f32 to vector<8x8xf32>
    %16 = arith.select %13, %15, %14 : vector<8x8xi1>, vector<8x8xf32>
    %c0_15 = arith.constant 0 : index
    %c0_16 = arith.constant 0 : index
    %17 = vector.load %arg9[%c0_15, %c0_16] : memref<8x1xf32, #tpu.memory_space<vmem>>, vector<8x1xf32>
    %cst_17 = arith.constant dense<0xFF800000> : vector<8xf32>
    %18 = vector.multi_reduction <maximumf>, %16, %cst_17 [1] : vector<8x8xf32> to vector<8xf32>
    %19 = vector.shape_cast %18 : vector<8xf32> to vector<8x1xf32>
    %20 = arith.maximumf %17, %19 : vector<8x1xf32>
    %21 = arith.subf %17, %20 : vector<8x1xf32>
    %22 = math.exp %21 : vector<8x1xf32>
    %23 = vector.broadcast %20 : vector<8x1xf32> to vector<8x8xf32>
    %24 = arith.subf %16, %23 : vector<8x8xf32>
    %25 = math.exp %24 : vector<8x8xf32>
    %c0_18 = arith.constant 0 : index
    %c0_19 = arith.constant 0 : index
    %26 = vector.load %arg10[%c0_18, %c0_19] : memref<8x1xf32, #tpu.memory_space<vmem>>, vector<8x1xf32>
    %27 = arith.mulf %22, %26 : vector<8x1xf32>
    %cst_20 = arith.constant dense<0.000000e+00> : vector<8xf32>
    %28 = vector.multi_reduction <add>, %25, %cst_20 [1] : vector<8x8xf32> to vector<8xf32>
    %29 = vector.shape_cast %28 : vector<8xf32> to vector<8x1xf32>
    %30 = arith.addf %27, %29 : vector<8x1xf32>
    %c0_21 = arith.constant 0 : index
    %c0_22 = arith.constant 0 : index
    %31 = vector.load %arg10[%c0_21, %c0_22] : memref<8x1xf32, #tpu.memory_space<vmem>>, vector<8x1xf32>
    tpu.vector_store %arg10[%c0_21, %c0_22], %30 {strides = array<i32>} : memref<8x1xf32, #tpu.memory_space<vmem>>, vector<8x1xf32>,
    %c0_23 = arith.constant 0 : index
    %c0_24 = arith.constant 0 : index
    %c0_25 = arith.constant 0 : index
    %c0_26 = arith.constant 0 : index
    %32 = vector.load %arg6[%c0_23, %c0_24, %c0_25, %c0_26] : memref<1x1x8x32xf32, #tpu.memory_space<vmem>>, vector<1x1x8x32xf32>
    %33 = vector.shape_cast %32 : vector<1x1x8x32xf32> to vector<8x32xf32>
    %cst_27 = arith.constant dense<0.000000e+00> : vector<8x32xf32>
    %34 = tpu.matmul %25, %33, %cst_27 {dimension_numbers = #tpu.dot_dimension_numbers<[1], [0], [0], [1], [0, 0, 1, 1], [], []>} : vector<8x8xf32>, vector<8x32xf32>, vector<8x32xf32> -> vector<8x32xf32>
    %c0_28 = arith.constant 0 : index
    %c0_29 = arith.constant 0 : index
    %35 = vector.load %arg11[%c0_28, %c0_29] : memref<8x32xf32, #tpu.memory_space<vmem>>, vector<8x32xf32>
    %36 = vector.broadcast %22 : vector<8x1xf32> to vector<8x32xf32>
    %37 = arith.mulf %36, %35 : vector<8x32xf32>
    %38 = arith.addf %37, %34 : vector<8x32xf32>
    %c0_30 = arith.constant 0 : index
    %c0_31 = arith.constant 0 : index
    %39 = vector.load %arg11[%c0_30, %c0_31] : memref<8x32xf32, #tpu.memory_space<vmem>>, vector<8x32xf32>
    tpu.vector_store %arg11[%c0_30, %c0_31], %38 {strides = array<i32>} : memref<8x32xf32, #tpu.memory_space<vmem>>, vector<8x32xf32>,
    %c0_32 = arith.constant 0 : index
    %c0_33 = arith.constant 0 : index
    %40 = vector.load %arg9[%c0_32, %c0_33] : memref<8x1xf32, #tpu.memory_space<vmem>>, vector<8x1xf32>
    tpu.vector_store %arg9[%c0_32, %c0_33], %20 {strides = array<i32>} : memref<8x1xf32, #tpu.memory_space<vmem>>, vector<8x1xf32>,
    %c0_i32_34 = arith.constant 0 : i32
    %41 = arith.cmpi eq, %arg3, %c0_i32_34 : i32
    %42 = arith.extui %41 : i1 to i32
    %c0_i32_35 = arith.constant 0 : i32
    %43 = arith.cmpi ne, %42, %c0_i32_35 : i32
    scf.if %43 {
      %c0_36 = arith.constant 0 : index
      %c0_37 = arith.constant 0 : index
      %44 = vector.load %arg10[%c0_36, %c0_37] : memref<8x1xf32, #tpu.memory_space<vmem>>, vector<8x1xf32>
      %45 = tpu.reciprocal %44 {approx = true} : vector<8x1xf32> -> vector<8x1xf32>
      %c0_38 = arith.constant 0 : index
      %c0_39 = arith.constant 0 : index
      %46 = vector.load %arg11[%c0_38, %c0_39] : memref<8x32xf32, #tpu.memory_space<vmem>>, vector<8x32xf32>
      %47 = vector.broadcast %45 : vector<8x1xf32> to vector<8x32xf32>
      %48 = arith.mulf %46, %47 : vector<8x32xf32>
      %c0_40 = arith.constant 0 : index
      %c0_41 = arith.constant 0 : index
      %c0_42 = arith.constant 0 : index
      %c0_43 = arith.constant 0 : index
      %49 = vector.load %arg8[%c0_40, %c0_41, %c0_42, %c0_43] : memref<1x1x8x32xf32, #tpu.memory_space<vmem>>, vector<1x1x8x32xf32>
      %50 = vector.shape_cast %49 : vector<1x1x8x32xf32> to vector<8x32xf32>
      %51 = vector.shape_cast %48 : vector<8x32xf32> to vector<1x1x8x32xf32>
      tpu.vector_store %arg8[%c0_40, %c0_41, %c0_42, %c0_43], %51 {strides = array<i32>} : memref<1x1x8x32xf32, #tpu.memory_space<vmem>>, vector<1x1x8x32xf32>,
    } else {
    }
    return
  }
  func.func @transform_0(%arg0: i32, %arg1: i32, %arg2: i32, %arg3: i32) -> (i32, i32, i32, i32) {
    %c0_i32 = arith.constant 0 : i32
    %c0_i32_0 = arith.constant 0 : i32
    return %arg0, %arg1, %arg2, %c0_i32 : i32, i32, i32, i32
  }
  func.func @transform_1(%arg0: i32, %arg1: i32, %arg2: i32, %arg3: i32) -> (i32, i32, i32, i32) {
    %c0_i32 = arith.constant 0 : i32
    %c0_i32_0 = arith.constant 0 : i32
    return %arg0, %arg1, %arg3, %c0_i32 : i32, i32, i32, i32
  }
  func.func @transform_2(%arg0: i32, %arg1: i32, %arg2: i32, %arg3: i32) -> (i32, i32, i32, i32) {
    %c0_i32 = arith.constant 0 : i32
    %c0_i32_0 = arith.constant 0 : i32
    return %arg0, %arg1, %arg3, %c0_i32 : i32, i32, i32, i32
  }
  func.func @transform_3(%arg0: i32, %arg1: i32, %arg2: i32, %arg3: i32) -> (i32, i32, i32, i32) {
    %c0_i32 = arith.constant 0 : i32
    %c0_i32_0 = arith.constant 0 : i32
    return %arg0, %c0_i32, %arg2, %arg3 : i32, i32, i32, i32
  }
  func.func @transform_4(%arg0: i32, %arg1: i32, %arg2: i32, %arg3: i32) -> (i32, i32, i32, i32) {
    %c0_i32 = arith.constant 0 : i32
    %c0_i32_0 = arith.constant 0 : i32
    return %arg0, %arg1, %arg2, %c0_i32 : i32, i32, i32, i32
  }
}

</mosaic_0001>

<bundles_post_ra>
// kernel: tpu_custom_call.1
= control target key start
LH: loop header
LB: loop body
LE: loop exit
PB: predicated region body
PF: predicated region fallthrough
CT: control target
= control target key end

     0   :  { %s1624_s0 = inlined_call_operand.hbm [shape: f32[2,4,8,32], index: 0, kind: input, shape index: {}]   ;;  %s1625_s1 = inlined_call_operand.hbm [shape: f32[2,4,8,32], index: 1, kind: input, shape index: {}]   ;;  %s1626_s2 = inlined_call_operand.hbm [shape: f32[2,4,8,32], index: 2, kind: input, shape index: {}]   ;;  %s1627_s3 = inlined_call_operand.hbm [shape: f32[2,1,8,8], index: 3, kind: input, shape index: {}]   ;;  %s1628_s4 = inlined_call_operand.hbm [shape: f32[2,4,8,32], index: 4, kind: output, shape index: {}]  }
   0x1   :  { %1646 = sst [smem:[#allocation27_spill]] %s1625_s1 }
   0x2   :  { %1647 = sst [smem:[#allocation28_spill]] %s1628_s4 }
   0x3   :  { %9 = vsyncpa [#allocation6], 0 }
   0x4   :  { %11 = vsyncpa [#allocation6 + $0x1], 0 }
   0x5   :  { %12 = vsyncpa [#allocation9], 0 }
   0x6   :  { %14 = vsyncpa [#allocation9 + $0x1], 0 }
   0x7   :  { %15 = vsyncpa [#allocation12], 0 }
   0x8   :  { %17 = vsyncpa [#allocation12 + $0x1], 0 }
   0x9   :  { %18 = vsyncpa [#allocation7], 0 }
   0xa   :  { %20 = vsyncpa [#allocation7 + $0x1], 0  ;;  %s1235_s15 = smov 0   ;;  %s1237_s16 = smov 0  }
   0xb   :  { %s1239_s17 = smov 0   ;;  %s1241_s18 = smov 0  }
   0xc   :  { %s1243_s19 = smov 0   ;;  %s1245_s20 = smov 0  }
   0xd   :  { %s1247_s21 = smov 0   ;;  %s1249_s22 = smov 0  }
   0xe   :  { %s1251_s23 = smov 0   ;;  %s1253_s24 = smov 0  }
   0xf   :  { %s1255_s25 = smov 0  }
  0x10 LB: > { %1648 = sst [smem:[#allocation18_spill]] %s1171_s18  ;;  %s1291_s26 = sadd.s32 4294967295, %s1199_s25   ;;  %s1199_s25 = sphi %s1255_s25, %s26_s25   ;;  %s1195_s24 = sphi %s1253_s24, %s1696_s24   ;;  %s1191_s23 = sphi %s1251_s23, %s1688_s23   ;;  %s1187_s22 = sphi %s1249_s22, %s1695_s22   ;;  %s1183_s21 = sphi %s1247_s21, %s1687_s21   ;;  %s1179_s20 = sphi %s1245_s20, %s1686_s20   ;;  %s1175_s19 = sphi %s1243_s19, %s1694_s19   ;;  %s1171_s18 = sphi %s1241_s18, %s1693_s18   ;;  %s1167_s17 = sphi %s1239_s17, %s1692_s17   ;;  %s1163_s16 = sphi %s1237_s16, %s1691_s16   ;;  %s1159_s15 = sphi %s1235_s15, %s1690_s15  }
  0x11   : > { %1649 = sst [smem:[#allocation19_spill]] %s1179_s20  ;;  %s778_s27 = sadd.s32 4294967294, %s1199_s25  }
  0x12   : > { %1650 = sst [smem:[#allocation20_spill]] %s1183_s21  ;;  %s48_s28 = sadd.s32 1, %s1191_s23 }
  0x13   : > { %1651 = sst [smem:[#allocation21_spill]] %s1191_s23  ;;  %s52_s29 = sadd.s32 1, %s1195_s24 }
  0x14   : > { %p50_p0 = scmp.ge.s32.totalorder %s48_s28, 4  ;;  %s63_s30 = sadd.s32 1, %s1179_s20 }
  0x15   : > { %p70_p1 = scmp.ne.s32.totalorder %s1179_s20, %s1175_s19  ;;  %p1638_p2 = scmp.eq.s32.totalorder %s1199_s25, 0 }
  0x16   : > { %s1698_s28 = smov (%p50_p0, %s48_s28), 0  ;;  %s1700_s29 = smov (!%p50_p0, %s52_s29), %s1195_s24 }
  0x17   : > { %1652 = sst [smem:[#allocation22_spill]] %s1698_s28  ;;  %s57_s5 = ssub.s32 %s1191_s23, %s1698_s28 }
  0x18   : > { %p1307_p3 = por %p1638_p2, %p70_p1  ;;  %p54_p4 = scmp.ge.s32.totalorder %s1700_s29, 2 }
  0x19   : > { %p76_p5 = scmp.ne.s32.totalorder %s1175_s19, %s1171_s18  ;;  %p1637_p6 = scmp.eq.s32.totalorder %s1291_s26, 0 }
  0x1a   : > { %p194_p7 = scmp.eq.s32.totalorder %s1291_s26, 7  ;;  %s1702_s29 = smov (%p54_p4, %s1700_s29), 0 }
  0x1b   : > { %1654 = sst [smem:[#allocation23_spill]] %s1702_s29  ;;  %p1319_p8 = por %p1637_p6, %p76_p5 }
  0x1c   : > { %p1323_p9 = por %p194_p7, %p70_p1  ;;  %s1329_s9 = ssub.s32 %s1195_s24, %s1702_s29 }
  0x1d   : > { %s1655_s7 = scalar_select %p1319_p8, 1, 0 }
  0x1e   : > { %s1656_s8 = scalar_select %p1323_p9, 1, 0 }
  0x1f   : > { %p200_p10 = scmp.eq.s32.totalorder %s778_s27, 7  ;;  %s58_s10 = sor.u32 %s57_s5, %s1329_s9 }
  0x20   : > { %1657 = sst [smem:[#allocation24_spill]] %s1656_s8  ;;  %p61_p12 = scmp.eq.s32.totalorder %s58_s10, 0 }
  0x21   : > { %p1333_p13 = por %p200_p10, %p76_p5  ;;  %p1636_p0 = scmp.lt.s32.totalorder %s1199_s25, 8 }
  0x22   : > { %s1339_s12 = scalar_select %p61_p12, %s1179_s20, %s63_s30  }
  0x23   : > { %s1658_s11 = scalar_select %p1333_p13, 1, 0 }
  0x24   : > { %1660 = sst [smem:[#allocation26_spill]] %s1339_s12  ;;  %s1632_s13 = sand.u32 1, %s1179_s20  }
  0x25   : > { %1659 = sst [smem:[#allocation25_spill]] %s1658_s11  ;;  %s782_s14 = sshll.u32 %s1195_s24, 2 }
  0x26   : > { %s1345_s28 = sshll.u32 %s1632_s13, 3  ;;  %s230_s29 = sadd.s32 %s1191_s23, %s782_s14 }
  0x27   : > { %s1348_s18 = sshll.u32 %s230_s29, 7  ;;  %p1354_p1 = pnand %p1636_p0, %p1307_p3 }
  0x28   : > { %s241_s5 = sand.u32 1, %s1199_s25   ;;  %s1662_s1 = sld [smem:[#allocation27_spill]] }
  0x29   : > { %s1661_s27 = scalar_select %p1354_p1, 1, 0 }
  0x2a   : > { %s245_s29 = scalar_lea.vmem [#allocation8], %s1345_s28  ;;  %s1369_s6 = scalar_lea.sflag [#allocation9], %s241_s5 }
  0x2b   : > { %s255_s14 = sshll.u32 %s245_s29, 4  ;;  %p1375_p5 = pneg %p1354_p1  ;;  %s1366_s14 = int_to_ptr.vmem [resolvable:$true] %s255_s14 }
  0x2e   : > { %s1363_s12 = scalar_lea.hbm %s1662_s1, %s1348_s18  ;;  %s954_s29 = scalar_lea.hbm %s1662_s1, 1024 }
  0x2f   : > { %s949_s13 = scalar_lea.hbm %s1363_s12, 128  ;;  %p955_p12 = scmp.lt.u32.totalorder %s1363_s12, %s1662_s1 }
  0x30   : > { %p950_p3 = scmp.ne.s32.totalorder %s1363_s12, %s949_s13  ;;  %p956_p0 = scmp.lt.u32.totalorder %s954_s29, %s949_s13 }
  0x31   : > { %p958_p2 = scmp.lt.u32.totalorder %s949_s13, %s1363_s12 }
  0x32   : > { %p952_p7 = pnand %p1375_p5, %p950_p3  ;;  %p957_p6 = por %p956_p0, %p955_p12 }
  0x34   : > { %p953_p10 = pneg %p952_p7  ;;  %p959_p11 = por %p958_p2, %p957_p6 }
  0x36   : > { %p960_p4 = pnand %p959_p11, %p953_p10 }
  0x38   : > { %963 = shalt.err (!%p960_p4)
}
  0x39   : > { %s964_s5 = scalar_lea.vmem %s1366_s14, 128  ;;  %s1201_s30 = smov [#allocation8]  }
  0x3a   : > { %p965_p3 = scmp.ne.s32.totalorder %s1366_s14, %s964_s5  ;;  %s969_s10 = sshll.u32 %s1201_s30, 4  ;;  %s970_s10 = int_to_ptr.vmem [resolvable:$false] %s969_s10 }
  0x3b   : > { %s971_s4 = scalar_lea.vmem %s970_s10, 256  ;;  %p972_p9 = scmp.lt.s32.totalorder %s1366_s14, %s970_s10 }
  0x3c   : > { %p967_p7 = pnand %p965_p3, %p1375_p5  ;;  %p973_p8 = scmp.lt.s32.totalorder %s971_s4, %s964_s5 }
  0x3e   : > { %p968_p13 = pneg %p967_p7  ;;  %p974_p0 = por %p973_p8, %p972_p9 }
  0x40   : > { %p975_p12 = pnand %p974_p0, %p968_p13 }
  0x42   : > { %978 = shalt.err (!%p975_p12)
}
  0x43   : > { %836 = dma.hbm_to_vmem [thread:$0]  (!%p1354_p1), %s1363_s12, 128, %s1366_s14, %s1369_s6  }
  0x44   : > { %p301_p2 = scmp.lt.s32.totalorder %s1199_s25, 9  ;;  %p1664_p6 = scmp.ge.s32.totalorder %s1199_s25, 1 }
  0x45   : > { %s1410_s5 = scalar_lea.hbm %s1624_s0, %s1348_s18  ;;  %s224_s30 = scalar_lea.vmem [#allocation5], %s1345_s28 }
  0x46   : > { %p1402_p11 = pnand %p1664_p6, %p301_p2  ;;  %s234_s10 = sshll.u32 %s224_s30, 4  ;;  %s235_s10 = int_to_ptr.vmem [resolvable:$true] %s234_s10 }
  0x47   : > { %s1666_s4 = sand.u32 1, %s1179_s20   ;;  %s979_s14 = scalar_lea.hbm %s1410_s5, 128 }
  0x48   : > { %s1665_s11 = scalar_select %p1402_p11, 1, 0 }
  0x49   : > { %s221_s12 = scalar_lea.sflag [#allocation6], %s1666_s4  ;;  %p980_p8 = scmp.ne.s32.totalorder %s1410_s5, %s979_s14 }
  0x4a   : > { %s984_s13 = scalar_lea.hbm %s1624_s0, 1024  ;;  %p985_p4 = scmp.lt.u32.totalorder %s1410_s5, %s1624_s0 }
  0x4b   : > { %p982_p9 = pnand %p980_p8, %p1375_p5  ;;  %p986_p10 = scmp.lt.u32.totalorder %s984_s13, %s979_s14 }
  0x4c   : > { %p988_p7 = scmp.lt.u32.totalorder %s979_s14, %s1410_s5 }
  0x4d   : > { %p983_p13 = pneg %p982_p9  ;;  %p987_p3 = por %p986_p10, %p985_p4 }
  0x4f   : > { %p989_p0 = por %p988_p7, %p987_p3 }
  0x51   : > { %p990_p12 = pnand %p989_p0, %p983_p13 }
  0x53   : > { %993 = shalt.err (!%p990_p12)
}
  0x54   : > { %s994_s30 = scalar_lea.vmem %s235_s10, 128  ;;  %s1202_s4 = smov [#allocation5]  }
  0x55   : > { %p995_p2 = scmp.ne.s32.totalorder %s235_s10, %s994_s30  ;;  %s999_s20 = sshll.u32 %s1202_s4, 4  ;;  %s1000_s20 = int_to_ptr.vmem [resolvable:$false] %s999_s20 }
  0x56   : > { %s1001_s1 = scalar_lea.vmem %s1000_s20, 256  ;;  %p1002_p9 = scmp.lt.s32.totalorder %s235_s10, %s1000_s20 }
  0x57   : > { %p997_p6 = pnand %p995_p2, %p1375_p5  ;;  %p1003_p11 = scmp.lt.s32.totalorder %s1001_s1, %s994_s30 }
  0x59   : > { %p998_p8 = pneg %p997_p6  ;;  %p1004_p1 = por %p1003_p11, %p1002_p9 }
  0x5b   : > { %p1005_p4 = pnand %p1004_p1, %p998_p8 }
  0x5d   : > { %1008 = shalt.err (!%p1005_p4)
}
  0x5e   : > { %p1667_p10 = scmp.ne.s32.totalorder %s1661_s27, 0  ;;  %s1436_s14 = scalar_lea.hbm %s1626_s2, %s1348_s18 }
  0x5f   : > { %s266_s20 = scalar_lea.vmem [#allocation10], %s1345_s28  ;;  %s1009_s29 = scalar_lea.hbm %s1436_s14, 128 }
  0x60   : > { %833 = dma.hbm_to_vmem [thread:$0]  (!%p1667_p10), %s1410_s5, 128, %s235_s10, %s221_s12  }
  0x61   : > { %s276_s13 = sshll.u32 %s266_s20, 4  ;;  %p1010_p1 = scmp.ne.s32.totalorder %s1436_s14, %s1009_s29  ;;  %s277_s13 = int_to_ptr.vmem [resolvable:$true] %s276_s13 }
  0x62   : > { %s1014_s5 = scalar_lea.hbm %s1626_s2, 1024  ;;  %p1015_p3 = scmp.lt.u32.totalorder %s1436_s14, %s1626_s2 }
  0x63   : > { %p1012_p11 = pnand %p1010_p1, %p1375_p5  ;;  %p1016_p7 = scmp.lt.u32.totalorder %s1014_s5, %s1009_s29 }
  0x64   : > { %p1018_p12 = scmp.lt.u32.totalorder %s1009_s29, %s1436_s14 }
  0x65   : > { %p1013_p13 = pneg %p1012_p11  ;;  %p1017_p0 = por %p1016_p7, %p1015_p3 }
  0x67   : > { %p1019_p2 = por %p1018_p12, %p1017_p0 }
  0x69   : > { %p1020_p6 = pnand %p1019_p2, %p1013_p13 }
  0x6b   : > { %1023 = shalt.err (!%p1020_p6)
}
  0x6c   : > { %s1024_s18 = scalar_lea.vmem %s277_s13, 128  ;;  %s1203_s28 = smov [#allocation10]  }
  0x6d   : > { %p1025_p8 = scmp.ne.s32.totalorder %s277_s13, %s1024_s18  ;;  %s1029_s1 = sshll.u32 %s1203_s28, 4  ;;  %s1030_s1 = int_to_ptr.vmem [resolvable:$false] %s1029_s1 }
  0x6e   : > { %s1031_s21 = scalar_lea.vmem %s1030_s1, 256  ;;  %p1032_p1 = scmp.lt.s32.totalorder %s277_s13, %s1030_s1 }
  0x6f   : > { %p1027_p9 = pnand %p1025_p8, %p1375_p5  ;;  %p1033_p11 = scmp.lt.s32.totalorder %s1031_s21, %s1024_s18 }
  0x71   : > { %p1028_p4 = pneg %p1027_p9  ;;  %p1034_p10 = por %p1033_p11, %p1032_p1 }
  0x73   : > { %p1035_p3 = pnand %p1034_p10, %p1028_p4 }
  0x75   : > { %1038 = shalt.err (!%p1035_p3)
}
  0x76   : > { %p1668_p7 = scmp.ne.s32.totalorder %s1661_s27, 0  ;;  %s153_s23 = sadd.s32 1, %s1167_s17 }
  0x77   : > { %p1669_p5 = scmp.eq.s32.totalorder %s1329_s9, 0  ;;  %p160_p10 = scmp.ne.s32.totalorder %s1167_s17, %s1163_s16 }
  0x78   : > { %839 = dma.hbm_to_vmem [thread:$0]  (!%p1668_p7), %s1436_s14, 128, %s277_s13, %s1369_s6  }
  0x79   : > { %s1461_s8 = scalar_select %p1669_p5, %s1167_s17, %s153_s23  }
  0x7a   : > { %p166_p13 = scmp.ne.s32.totalorder %s1163_s16, %s1159_s15  ;;  %s283_s27 = sand.u32 1, %s1167_s17  }
  0x7b   : > { %s791_s20 = sshll.u32 %s1195_s24, 7  ;;  %p1670_p0 = scmp.eq.s32.totalorder %s1199_s25, 0 }
  0x7c   : > { %p1671_p2 = scmp.eq.s32.totalorder %s1291_s26, 0  ;;  %s790_s30 = sshll.u32 %s283_s27, 3 }
  0x7d   : > { %p162_p12 = por %p160_p10, %p1670_p0  ;;  %s1480_s6 = scalar_lea.hbm %s1627_s3, %s791_s20 }
  0x7e   : > { %p1473_p6 = por %p166_p13, %p1671_p2  ;;  %s287_s15 = scalar_lea.vmem [#allocation11], %s790_s30 }
  0x7f   : > { %s296_s9 = sshll.u32 %s287_s15, 4  ;;  %p1673_p8 = scmp.lt.s32.totalorder %s1199_s25, 8  ;;  %s1488_s9 = int_to_ptr.vmem [resolvable:$true] %s296_s9 }
  0x80   : > { %s284_s13 = scalar_lea.sflag [#allocation12], %s283_s27  ;;  %s1039_s10 = scalar_lea.hbm %s1480_s6, 128 }
  0x81   : > { %p1484_p9 = pnand %p1673_p8, %p162_p12  ;;  %p1040_p4 = scmp.ne.s32.totalorder %s1480_s6, %s1039_s10 }
  0x82   : > { %s1044_s28 = scalar_lea.hbm %s1627_s3, 256  ;;  %p1045_p7 = scmp.lt.u32.totalorder %s1480_s6, %s1627_s3 }
  0x83   : > { %p1041_p1 = pneg %p1484_p9  ;;  %p1046_p5 = scmp.lt.u32.totalorder %s1044_s28, %s1039_s10 }
  0x84   : > { %p1048_p13 = scmp.lt.u32.totalorder %s1039_s10, %s1480_s6 }
  0x85   : > { %p1042_p11 = pnand %p1041_p1, %p1040_p4  ;;  %p1047_p10 = por %p1046_p5, %p1045_p7 }
  0x87   : > { %p1043_p3 = pneg %p1042_p11  ;;  %p1049_p0 = por %p1048_p13, %p1047_p10 }
  0x89   : > { %p1050_p12 = pnand %p1049_p0, %p1043_p3 }
  0x8b   : > { %1053 = shalt.err (!%p1050_p12)
}
  0x8c   : > { %s1054_s23 = scalar_lea.vmem %s1488_s9, 128  ;;  %s1204_s27 = smov [#allocation11]  }
  0x8d   : > { %p1055_p2 = scmp.ne.s32.totalorder %s1488_s9, %s1054_s23  ;;  %s1059_s20 = sshll.u32 %s1204_s27, 4  ;;  %s1060_s20 = int_to_ptr.vmem [resolvable:$false] %s1059_s20 }
  0x8e   : > { %s1061_s30 = scalar_lea.vmem %s1060_s20, 256  ;;  %p1062_p11 = scmp.lt.s32.totalorder %s1488_s9, %s1060_s20 }
  0x8f   : > { %p1057_p8 = pnand %p1055_p2, %p1041_p1  ;;  %p1063_p7 = scmp.lt.s32.totalorder %s1061_s30, %s1054_s23 }
  0x91   : > { %p1058_p4 = pneg %p1057_p8  ;;  %p1064_p5 = por %p1063_p7, %p1062_p11 }
  0x93   : > { %p1065_p10 = pnand %p1064_p5, %p1058_p4 }
  0x95   : > { %1068 = shalt.err (!%p1065_p10)
}
  0x96   : > { %842 = dma.hbm_to_vmem [thread:$0]  (!%p1484_p9), %s1480_s6, 128, %s1488_s9, %s284_s13  }
  0x97   : > { %p1675_p3 = scmp.ne.s32.totalorder %s1665_s11, 0 }
  0x98   : > { %s1518_s4 = sand.u32 (!%p1675_p3), 1, %s1175_s19   ;;  %p1676_p1 = scmp.ne.s32.totalorder (!%p1675_p3), %s1655_s7, 0 }
  0x99   : > { %305 = sbr.rel (%p1675_p3) target bundleno = 985 (0x3d9), region = 36  ;;  %s1521_s5 = sshll.u32 (!%p1675_p3), %s1518_s4, 3 }
  0x9a   : > { %s308_s15 = scalar_lea.sflag (!%p1675_p3), [#allocation6], %s1518_s4  ;;  %s311_s10 = scalar_lea.vmem (!%p1675_p3), [#allocation5], %s1521_s5 }
  0xa0   : > { %1142 = dma.done.wait (%p1676_p1), %s308_s15, 128  }
  0xa1   : > { %1144 = vsyncadd (%p1676_p1), %s308_s15, 4294967168  ;;  %s316_s11 = sand.u32 1, %s1291_s26   ;;  %s320_s9 = scalar_lea.vmem [#allocation8], %s1521_s5 }
  0xa2   : > { %s317_s6 = scalar_lea.sflag [#allocation9], %s316_s11 }
  0xa3   : > { %1146 = dma.done.wait (%p1676_p1), %s317_s6, 256  }
  0xa4   : > { %1148 = vsyncadd (%p1676_p1), %s317_s6, 4294967040  ;;  %s334_s14 = sand.u32 1, %s1163_s16   ;;  %s329_s12 = scalar_lea.vmem [#allocation10], %s1521_s5 }
  0xa5   : > { %s796_s13 = sshll.u32 %s334_s14, 3  ;;  %s335_s18 = scalar_lea.sflag [#allocation12], %s334_s14 }
  0xa6   : > { %s338_s28 = scalar_lea.vmem [#allocation11], %s796_s13 }
  0xa7   : > { %1150 = dma.done.wait (%p1473_p6), %s335_s18, 128  }
  0xa8   : > { %1152 = vsyncadd (%p1473_p6), %s335_s18, 4294967168  ;;  %vm385_vm0 = vcmask 261120   ;;  %v1205_v0 = vmov 0.0   ;;  %vm1206_vm1 = vmmov 0   ;;  %v389_v1 = vld [vmem:[%s320_s9] sm:$0xff]  ;;  %v387_v2 = vld [vmem:[%s311_s10] sm:$0xff] }
  0xa9   : > { %810 = vmatprep.subr.mxu0 %v1205_v0  ;;  %386 = vst.msk [vmem:[#allocation4] sm:$0xff] %vm385_vm0, %v1205_v0  ;;  %812 = vmatprep.mubr.msk.f32.mxu0 %vm1206_vm1, %v1205_v0  ;;  %v388_v3 = vmul.f32 0.17677669, %v387_v2  ;;  %vm382_vm2 = vcmask 7168   ;;  %v1207_v4 = vmov -inf   ;;  %v467_v5 = vld [vmem:[%s338_s28] sm:$0xff] }
  0xaa   : > { %815 = vmatprep.subr.mxu1 %v1205_v0  ;;  %817 = vmatprep.mubr.msk.f32.mxu1 %vm1206_vm1, %v1205_v0  ;;  %383 = vst.msk [vmem:[#allocation2] sm:$0xff] %vm382_vm2, %v1207_v4  ;;  %384 = vst.msk [vmem:[#allocation3] sm:$0xff] %vm382_vm2, %v1205_v0  ;;  %vm468_vm3 = vcmp.eq.f32.partialorder %v467_v5, 0.0  ;;  %vm472_vm4 = vcmask 64512   ;;  %v1208_v11 = vmov 0   ;;  %v496_v16 = vld [vmem:[%s329_s12] sm:$0xff] }
  0xab   : > { %811 = vmatpush3.xpose.msk.msra.mxu0 %vm385_vm0, %v389_v1  ;;  %941 = vset.pattern.permute.xlu0 %v1208_v11  ;;  %s1677_s26 = sld [smem:[#allocation20_spill]]  ;;  %s1678_s7 = sld [smem:[#allocation24_spill]] }
  0xac   : > { %942 = vset.pattern.permute.xlu1 %v1208_v11  ;;  %816 = vmatpush3.msra.mxu1 %v496_v16  ;;  %s802_s29 = sshll.u32 %s1187_s22, 2  ;;  %s377_s23 = scalar_lea.vmem [#allocation13], %s1521_s5 }
  0xad   : > { %s610_s27 = sshll.u32 %s377_s23, 4  ;;  %s1679_s15 = sld [smem:[#allocation28_spill]]  ;;  %s1562_s27 = int_to_ptr.vmem [resolvable:$true] %s610_s27 }
  0xae   : > { %813 = vmatmul.mubr.msk.f32.vlgmr.msra.gmra.mrb[0].mxu0 %vm385_vm0, %v388_v3  ;;  %s594_s22 = scalar_lea.sflag [#allocation7], %s1518_s4  ;;  %s1069_s6 = scalar_lea.vmem %s1562_s27, 128 }
  0xaf   : > { %p1070_p6 = scmp.ne.s32.totalorder %s1562_s27, %s1069_s6  ;;  %s1209_s5 = smov [#allocation13]  }
  0xb0   : > { %v570_v30 = vld [vmem:[#allocation4] sm:$0xff]  ;;  %s1073_s9 = sshll.u32 %s1209_s5, 4  ;;  %s1074_s9 = int_to_ptr.vmem [resolvable:$false] %s1073_s9 }
  0xb1   : > { %v471_v12 = vld [vmem:[#allocation2] sm:$0xff]  ;;  %v488_v24 = vld [vmem:[#allocation3] sm:$0xff]  ;;  %s606_s1 = sadd.s32 %s1677_s26, %s802_s29  ;;  %p1681_p9 = scmp.ne.s32.totalorder %s1678_s7, 0 }
  0xb2   : > { %s803_s21 = sshll.u32 %s606_s1, 7  ;;  %s1075_s14 = scalar_lea.vmem %s1074_s9, 256 }
  0xb3   : > { %s1680_s10 = smov %s1679_s15  ;;  %s1560_s11 = scalar_lea.hbm %s1679_s15, %s803_s21 }
  0xb4   : > { %p1071_p13 = pnand %p1070_p6, %p1681_p9  ;;  %p1076_p12 = scmp.lt.s32.totalorder %s1562_s27, %s1074_s9 }
  0xb5   : > { %p1077_p2 = scmp.lt.s32.totalorder %s1075_s14, %s1069_s6 }
  0xb6   : > { %p1072_p0 = pneg %p1071_p13 }
  0xb7   : > { %p1078_p8 = por %p1077_p2, %p1076_p12 }
  0xb9   : > { %p1079_p4 = pnand %p1078_p8, %p1072_p0 }
 0x181   : > { %v463_v6 = vpop.f32.mrb[0].mxu0 }
 0x182   : > { %v469_v7 = vmul.f32 %v467_v5, %v463_v6  ;;  %v814_v8 = vpop.f32.mrb[1].mxu0 }
 0x184   : > { %v470_v9 = vsel %vm468_vm3, -4.0704336, %v469_v7 }
 0x185   : > { %v473_v10 = vsel %vm472_vm4, %v470_v9, -inf }
 0x186   : > { %474 = vmax.xlane.f32.xlu0 %v473_v10 }
 0x213   : > { %v475_v13 = vpop.xlane.xlu0 %474 }
 0x214   : > { %v476_v14 = vmax.f32 %v471_v12, %v475_v13 }
 0x216   : > { %v477_v15 = vsub.f32 %v471_v12, %v476_v14  ;;  %579 = vst.msk [vmem:[#allocation2] sm:$0xff] %vm382_vm2, %v476_v14  ;;  %482 = vperm.xlu0 %941, %v476_v14  }
 0x218   : > { %v478_v22 = vmul.f32 1.442695, %v477_v15 }
 0x295   : > { %v483_v17 = vpop.permute.xlu0 %482 }
 0x296   : > { %v485_v18 = vsub.f32 %v470_v9, %v483_v17 }
 0x298   : > { %v486_v19 = vmul.f32 1.442695, %v485_v18 }
 0x29a   : > { %943 = vpow2.f32 %v486_v19 }
 0x29b   : > { %945 = vpow2.f32 %v478_v22 }
 0x2a4   : > { %v944_v20 = vpop.eup %943 }
 0x2a5   : > { %818 = vmatmul.mubr.msk.f32.vlgmr.msra.gmra.mrb[0].mxu1 %vm472_vm4, %v944_v20  ;;  %v490_v21 = vsel %vm472_vm4, %v944_v20, 0.0  ;;  %v946_v23 = vpop.eup %945 }
 0x2a6   : > { %491 = vadd.xlane.f32.xlu1 %v490_v21  ;;  %v489_v25 = vmul.f32 %v946_v23, %v488_v24 }
 0x2b7   : > { %573 = vperm.xlu1 %942, %v946_v23  }
 0x333   : > { %v492_v26 = vpop.xlane.xlu1 %491 }
 0x334   : > { %v493_v27 = vadd.f32 %v492_v26, %v489_v25 }
 0x336   : > { %495 = vst.msk [vmem:[#allocation3] sm:$0xff] %vm382_vm2, %v493_v27 }
 0x337   : > { %v574_v31 = vpop.permute.xlu1 %573 }
 0x338   : > { %v576_v32 = vmul.f32 %v574_v31, %v570_v30 }
 0x33d   : > { %v583_v28 = vld [vmem:[#allocation3] sm:$0xff] }
 0x33e   : > { %947 = vrcp.f32 %v583_v28 }
 0x348   : > { %v948_v29 = vpop.eup %947 }
 0x349   : > { %588 = vperm.xlu1 %942, %v948_v29  }
 0x378   : > { %v566_v33 = vpop.f32.mrb[0].mxu1 }
 0x379   : > { %v577_v34 = vadd.f32 %v576_v32, %v566_v33  ;;  %v819_v35 = vpop.f32.mrb[1].mxu1 }
 0x37b   : > { %578 = vst.msk [vmem:[#allocation4] sm:$0xff] %vm385_vm0, %v577_v34 }
 0x382   : > { %v585_v36 = vld [vmem:[#allocation4] sm:$0xff] }
 0x3c8   : > { %v589_v37 = vpop.permute.xlu1 %588 }
 0x3c9   : > { %v591_v38 = vmul.f32 %v589_v37, %v585_v36 }
 0x3cb   : > { %592 = vst.msk [vmem:[%s377_s23] sm:$0xff] %vm385_vm0, %v591_v38 }
 0x3cc   : > { %1082 = shalt.err (!%p1079_p4)
}
 0x3cd   : > { %s1083_s4 = scalar_lea.hbm %s1560_s11, 128  ;;  %s1087_s18 = scalar_lea.hbm %s1680_s10, 1024 }
 0x3ce   : > { %p1084_p11 = scmp.ne.s32.totalorder %s1560_s11, %s1083_s4  ;;  %p1088_p10 = scmp.lt.u32.totalorder %s1560_s11, %s1680_s10 }
 0x3cf   : > { %p1089_p3 = scmp.lt.u32.totalorder %s1087_s18, %s1083_s4  ;;  %p1091_p6 = scmp.lt.u32.totalorder %s1083_s4, %s1560_s11 }
 0x3d0   : > { %p1085_p7 = pnand %p1084_p11, %p1681_p9 }
 0x3d1   : > { %p1090_p1 = por %p1089_p3, %p1088_p10 }
 0x3d2   : > { %p1086_p5 = pneg %p1085_p7 }
 0x3d3   : > { %p1092_p13 = por %p1091_p6, %p1090_p1 }
 0x3d5   : > { %p1093_p0 = pnand %p1092_p13, %p1086_p5 }
 0x3d7   : > { %1096 = shalt.err (!%p1093_p0)
}
 0x3d8   : > { %828 = dma.vmem_to_hbm [thread:$0]  (%p1681_p9), %s1562_s27, 128, %s1560_s11, %s594_s22  }
 0x3d9 PF: > { %s1682_s29 = sld [smem:[#allocation18_spill]]  ;;  %s1683_s1 = sld [smem:[#allocation25_spill]] }
 0x3da   : > { %p848_p12 = scmp.ge.s32.totalorder %s1199_s25, 2 }
 0x3df   : > { %s622_s21 = sand.u32 1, %s1682_s29   ;;  %p1684_p2 = scmp.ne.s32.totalorder %s1683_s1, 0 }
 0x3e0   : > { %s623_s23 = scalar_lea.sflag [#allocation7], %s622_s21 }
 0x3e1   : > { %p844_p8 = pnand %p848_p12, %p1684_p2 }
 0x3e3   : > { %1154 = dma.done.wait (!%p844_p8), %s623_s23, 128  }
 0x3e4   : > { %1156 = vsyncadd (!%p844_p8), %s623_s23, 4294967168  ;;  %s26_s25 = sadd.s32 1, %s1199_s25   ;;  %s1685_s7 = sld [smem:[#allocation19_spill]] }
 0x3e5   : > { %p23_p4 = scmp.ge.s32.totalorder %s26_s25, 10   ;;  %s1686_s20 = sld [smem:[#allocation26_spill]] }
 0x3e6   : > { %s1687_s21 = sld [smem:[#allocation21_spill]]  ;;  %s1688_s23 = sld [smem:[#allocation22_spill]] }
 0x3e7   : > { %s1689_s27 = sld [smem:[#allocation23_spill]]  ;;  %s1690_s15 = smov %s1163_s16 }
 0x3e8   : > { %s1691_s16 = smov %s1167_s17  ;;  %s1692_s17 = smov %s1461_s8 }
 0x3e9   : > { %s1693_s18 = smov %s1175_s19  ;;  %s1695_s22 = smov %s1195_s24 }
 0x3ea   : > { %s1694_s19 = smov %s1685_s7  ;;  %25 = sbr.rel (!%p23_p4) target bundleno = 16 (0x10), region = 126 }
 0x3ed   : > { %s1696_s24 = smov %s1689_s27 }
 0x3f1   :  { %628 = vsyncpa [#allocation6], 1 }
 0x3f2   :  { %630 = vsyncpa [#allocation6 + $0x1], 1 }
 0x3f3   :  { %631 = vsyncpa [#allocation9], 1 }
 0x3f4   :  { %633 = vsyncpa [#allocation9 + $0x1], 1 }
 0x3f5   :  { %634 = vsyncpa [#allocation12], 1 }
 0x3f6   :  { %636 = vsyncpa [#allocation12 + $0x1], 1 }
 0x3f7   :  { %637 = vsyncpa [#allocation7], 1 }
 0x3f8   :  { %639 = vsyncpa [#allocation7 + $0x1], 1 }

</bundles_post_ra>
